<compile_context>
chip_gen: v5e
topology: v5e:2x2
jax: 0.10.0
libtpu: 0.0.40
codegen_flags: <defaults>
</compile_context>

<pallas_src>
import math
import jax
import jax.numpy as jnp
from jax.experimental import pallas as pl
from jax.experimental.pallas import tpu as pltpu


# ---------------------------------------------------------------------------
# pe table construction (matches the PyTorch __init__ exactly)
# ---------------------------------------------------------------------------
def make_pe_table(max_len: int, d_model: int) -> jnp.ndarray:
    """Sinusoidal table, shape (max_len, 1, d_model), float32."""
    position = jnp.arange(0, max_len, dtype=jnp.float32)[:, None]            # (max_len, 1)
    div_term = jnp.exp(jnp.arange(0, d_model, 2, dtype=jnp.float32)
                       * (-math.log(10000.0) / d_model))                     # (d_model/2,)
    pe = jnp.zeros((max_len, d_model), dtype=jnp.float32)
    pe = pe.at[:, 0::2].set(jnp.sin(position * div_term))
    pe = pe.at[:, 1::2].set(jnp.cos(position * div_term))
    return pe[:, None, :]                                                     # (max_len, 1, d_model)


# ---------------------------------------------------------------------------
# Pallas kernel: one (ts, B, D) tile of x plus the matching (ts, 1, D) pe tile
# ---------------------------------------------------------------------------
def _pos_enc_kernel(scale_ref, x_ref, pe_ref, o_ref):
    # scale_ref: SMEM (1,) f32 ; x_ref/o_ref: VMEM (ts, B, D) ; pe_ref: VMEM (ts, 1, D) f32
    s = scale_ref[0]
    # f32 accumulate (mirrors PyTorch's fp32 pe buffer + promotion); the pe
    # broadcast over the batch/sublane axis is VPU work, which has huge slack
    # in an HBM-bandwidth-bound kernel.
    o_ref[...] = (x_ref[...].astype(jnp.float32) + s * pe_ref[...]).astype(o_ref.dtype)


# ---------------------------------------------------------------------------
# Tiling helpers
# ---------------------------------------------------------------------------
_SUBLANE = 8
_TILE_BUDGET_BYTES = 8 * 1024 * 1024   # double-buffered (x + out + pe) working set


def _choose_seq_tile(S: int, B: int, D: int, x_itemsize: int) -> int:
    """Seq tile whose double-buffered x+out+pe working set fits ~8 MiB."""
    bytes_per_row = 2 * (2 * B * D * x_itemsize + D * 4)   # 2x: double buffering
    ts = max(1, _TILE_BUDGET_BYTES // max(bytes_per_row, 1))
    # Guarantee >= 4 grid steps when S allows, so the single "parallel" axis
    # can be sharded across v7x's two TensorCores (no-op on v5e/v6e).
    if S >= 4 * _SUBLANE:
        ts = min(ts, max(_SUBLANE, S // 4))
    ts = min(ts, S)
    if ts < S:
        ts = max(_SUBLANE, (ts // _SUBLANE) * _SUBLANE)
        ts = min(ts, S)
    return int(ts)


# ---------------------------------------------------------------------------
# Entry point: PyTorch layout x = (S, B, D)
# ---------------------------------------------------------------------------
def positional_encoding(x: jnp.ndarray, pe: jnp.ndarray, scale: jnp.ndarray,
                        *, min_pallas_elements: int = 64 * 1024) -> jnp.ndarray:
    """x: (S, B, D); pe: (max_len, 1, D) f32; scale: (1,) f32. Returns (S, B, D)."""
    S, B, D = x.shape
    if S > pe.shape[0]:
        raise ValueError(f"seq_len {S} exceeds pe table max_len {pe.shape[0]}")

    # Tiny problems: a fused XLA broadcast-add beats any pallas_call dispatch
    # and keeps fusion with surrounding ops intact.
    if x.size < min_pallas_elements:
        return (x + scale[0] * pe[:S]).astype(x.dtype)

    pe_s = pe[:S].astype(jnp.float32)                 # (S, 1, D), kept fp32 (matches buffer)
    scale_f32 = scale.reshape((1,)).astype(jnp.float32)

    itemsize = jnp.dtype(x.dtype).itemsize
    ts = _choose_seq_tile(S, B, D, itemsize)
    grid = (pl.cdiv(S, ts),)                          # cdiv: no dropped ragged tail

    # vmem limit tied to the actual double-buffered working set (+2x headroom),
    # not a flat reservation (v7x only has 64 MiB physical / 32 MiB scoped).
    working_set = 2 * ts * (2 * B * D * itemsize + D * 4)
    vmem_limit = int(min(max(2 * working_set, 4 << 20), 32 << 20))

    return pl.pallas_call(
        _pos_enc_kernel,
        out_shape=jax.ShapeDtypeStruct((S, B, D), x.dtype),
        grid_spec=pltpu.PrefetchScalarGridSpec(
            num_scalar_prefetch=0,
            grid=grid,
            in_specs=[
                pl.BlockSpec(memory_space=pltpu.MemorySpace.SMEM),   # scale (1,) f32 scalar
                pl.BlockSpec((ts, B, D), lambda i: (i, 0, 0)),       # x: native (S,B,D) tiles
                pl.BlockSpec((ts, 1, D), lambda i: (i, 0, 0)),       # pe: fp32, broadcast in-kernel
            ],
            out_specs=pl.BlockSpec((ts, B, D), lambda i: (i, 0, 0)),
        ),
        compiler_params=pltpu.CompilerParams(
            dimension_semantics=("parallel",),
            vmem_limit_bytes=vmem_limit,
        ),
        # Pure elementwise update: write the result in place over x.
        # Inputs are (scale, x, pe) with num_scalar_prefetch=0, so x is input 1.
        input_output_aliases={1: 0},
    )(scale_f32, x, pe_s)


# ---------------------------------------------------------------------------
# Self-test
# ---------------------------------------------------------------------------
if __name__ == "__main__":
    max_len = 512
    key = jax.random.PRNGKey(0)
    k1, k2, k3 = jax.random.split(key, 3)
    scale = jnp.ones((1,), dtype=jnp.float32)   # nn.Parameter(torch.ones(1))

    # Case 1: module-scale demo shape (S=8, B=2, D=32) -- below the Pallas
    # threshold, served by the fused XLA path.
    S1, B1, D1 = 8, 2, 32
    x1 = jax.random.normal(k1, (S1, B1, D1), dtype=jnp.float32)
    pe1 = make_pe_table(max_len, D1)
    ref1 = x1 + scale[0] * pe1[:S1]
    out1 = jax.block_until_ready(positional_encoding(x1, pe1, scale))
    assert out1.shape == (S1, B1, D1)
    assert jnp.allclose(out1, ref1, atol=1e-6, rtol=1e-6)

    # Case 2: same tiny shape, forced through the Pallas kernel
    # (single grid step, full-dim (8, 2, 32) block).
    out1k = jax.block_until_ready(
        positional_encoding(x1, pe1, scale, min_pallas_elements=0))
    assert jnp.allclose(out1k, ref1, atol=1e-6, rtol=1e-6)

    # Case 3: lane-dense f32 shape exercising the tiled, pipelined Pallas path
    # (multiple "parallel" seq tiles, (S,B,D)-native, no transposes).
    S2, B2, D2 = 256, 2, 128
    x2 = jax.random.normal(k2, (S2, B2, D2), dtype=jnp.float32)
    pe2 = make_pe_table(max_len, D2)
    ref2 = x2 + scale[0] * pe2[:S2]
    out2 = jax.block_until_ready(positional_encoding(x2, pe2, scale))
    assert out2.shape == (S2, B2, D2)
    assert jnp.allclose(out2, ref2, atol=1e-6, rtol=1e-6)

    # Case 4: bf16 activations with the fp32 pe buffer (promote-then-cast,
    # like the PyTorch module).
    x3 = jax.random.normal(k3, (S2, B2, D2), dtype=jnp.float32).astype(jnp.bfloat16)
    ref3 = (x3 + scale[0] * pe2[:S2]).astype(jnp.bfloat16)
    out3 = jax.block_until_ready(positional_encoding(x3, pe2, scale))
    assert out3.dtype == jnp.bfloat16
    assert jnp.allclose(out3.astype(jnp.float32), ref3.astype(jnp.float32),
                        atol=2e-2, rtol=2e-2)

    print("KERNEL_OK")
</pallas_src>

<mosaic_0001>
module attributes {stable_mosaic.version = 11 : i64} {
  func.func @_pos_enc_kernel(%arg0: i32, %arg1: memref<1xf32, #tpu.memory_space<smem>>, %arg2: memref<8x2x32xf32, #tpu.memory_space<vmem>>, %arg3: memref<8x1x32xf32, #tpu.memory_space<vmem>>, %arg4: memref<8x2x32xf32, #tpu.memory_space<vmem>>) attributes {dimension_semantics = [#tpu.dimension_semantics<parallel>], iteration_bounds = array<i64: 1>, scalar_prefetch = 0 : i64, scratch_operands = 0 : i64, tpu.core_type = #tpu.core_type<tc>, window_params = [{transform_indices = @transform_0, window_bounds = array<i64: 1>}, {transform_indices = @transform_1, window_bounds = array<i64: 8, 2, 32>}, {transform_indices = @transform_2, window_bounds = array<i64: 8, 1, 32>}, {transform_indices = @transform_3, window_bounds = array<i64: 8, 2, 32>}]} {
    %c0 = arith.constant 0 : index
    %0 = memref.load %arg1[%c0] : memref<1xf32, #tpu.memory_space<smem>>
    %c0_0 = arith.constant 0 : index
    %c0_1 = arith.constant 0 : index
    %c0_2 = arith.constant 0 : index
    %1 = vector.load %arg2[%c0_0, %c0_1, %c0_2] : memref<8x2x32xf32, #tpu.memory_space<vmem>>, vector<8x2x32xf32>
    %c0_3 = arith.constant 0 : index
    %c0_4 = arith.constant 0 : index
    %c0_5 = arith.constant 0 : index
    %2 = vector.load %arg3[%c0_3, %c0_4, %c0_5] : memref<8x1x32xf32, #tpu.memory_space<vmem>>, vector<8x1x32xf32>
    %3 = vector.broadcast %0 : f32 to vector<8x1x32xf32>
    %4 = arith.mulf %3, %2 : vector<8x1x32xf32>
    %5 = vector.broadcast %4 : vector<8x1x32xf32> to vector<8x2x32xf32>
    %6 = arith.addf %1, %5 : vector<8x2x32xf32>
    %c0_6 = arith.constant 0 : index
    %c0_7 = arith.constant 0 : index
    %c0_8 = arith.constant 0 : index
    %7 = vector.load %arg4[%c0_6, %c0_7, %c0_8] : memref<8x2x32xf32, #tpu.memory_space<vmem>>, vector<8x2x32xf32>
    tpu.vector_store %arg4[%c0_6, %c0_7, %c0_8], %6 {strides = array<i32>} : memref<8x2x32xf32, #tpu.memory_space<vmem>>, vector<8x2x32xf32>,
    return
  }
  func.func @transform_0(%arg0: i32) -> i32 {
    %c0_i32 = arith.constant 0 : i32
    %c0_i32_0 = arith.constant 0 : i32
    return %c0_i32 : i32
  }
  func.func @transform_1(%arg0: i32) -> (i32, i32, i32) {
    %c0_i32 = arith.constant 0 : i32
    %c0_i32_0 = arith.constant 0 : i32
    %c0_i32_1 = arith.constant 0 : i32
    return %arg0, %c0_i32, %c0_i32_0 : i32, i32, i32
  }
  func.func @transform_2(%arg0: i32) -> (i32, i32, i32) {
    %c0_i32 = arith.constant 0 : i32
    %c0_i32_0 = arith.constant 0 : i32
    %c0_i32_1 = arith.constant 0 : i32
    return %arg0, %c0_i32, %c0_i32_0 : i32, i32, i32
  }
  func.func @transform_3(%arg0: i32) -> (i32, i32, i32) {
    %c0_i32 = arith.constant 0 : i32
    %c0_i32_0 = arith.constant 0 : i32
    %c0_i32_1 = arith.constant 0 : i32
    return %arg0, %c0_i32, %c0_i32_0 : i32, i32, i32
  }
}

</mosaic_0001>

<bundles_post_ra>
// kernel: tpu_custom_call.1
= control target key start
LH: loop header
LB: loop body
LE: loop exit
PB: predicated region body
PF: predicated region fallthrough
CT: control target
= control target key end

     0   :  { %9 = vsyncpa [#allocation4], 0  ;;  %s245_s0 = inlined_call_operand.<no memory space> [shape: f32[1], index: 0, kind: input, shape index: {}]   ;;  %s246_s1 = inlined_call_operand.hbm [shape: f32[8,2,32], index: 1, kind: input, shape index: {}, may-alias: {1,3}]   ;;  %s247_s2 = inlined_call_operand.vmem [shape: f32[8,1,32], index: 2, kind: input, shape index: {}]   ;;  %s248_s3 = inlined_call_operand.hbm [shape: f32[8,2,32], index: 3, kind: output, shape index: {}, may-alias: {1,3}]  }
   0x1   :  { %10 = vsyncpa [#allocation5], 0  ;;  %s17_s14 = sshll.u32 %s246_s1, 4  ;;  %s174_s15 = smov [#allocation3]   ;;  %s18_s14 = int_to_ptr.hbm [resolvable:$true] %s17_s14 }
   0x2   :  { %s19_s16 = sshll.u32 %s174_s15, 4  ;;  %s175_s17 = smov 32   ;;  %s20_s16 = int_to_ptr.vmem [resolvable:$true] %s19_s16 }
   0x3   :  { %s176_s18 = smov 2  }
   0x4   :  { %25 = dma.hbm_to_vmem [thread:$0]  %s18_s14, 256, %s20_s16, [#allocation4], %s175_s17, %s175_s17, %s176_s18  }
   0x5   :  { %170 = dma.done.wait [#allocation4], 256  }
   0x6   :  { %171 = vsyncadd [#allocation4], 4294967040  ;;  %v49_v0 = vstv %s245_s0  ;;  %v41_v1 = vld [vmem:[%s247_s2] sm:$0x1]  ;;  %v42_v3 = vld [vmem:[%s247_s2 + $0x1] sm:$0x1] }
   0x7   :  { %v50_v2 = vmul.f32 %v49_v0, %v41_v1  ;;  %v43_v4 = vld [vmem:[%s247_s2 + $0x2] sm:$0x1]  ;;  %v33_v5 = vld [vmem:[#allocation3] sm:$0x3]  ;;  %v51_v7 = vmul.f32 %v49_v0, %v42_v3  ;;  %v44_v9 = vld [vmem:[%s247_s2 + $0x3] sm:$0x1] }
   0x8   :  { %v34_v6 = vld [vmem:[#allocation3 + $0x2] sm:$0x3]  ;;  %v52_v8 = vmul.f32 %v49_v0, %v43_v4  ;;  %vm90_vm0 = vcmask 254976   ;;  %v35_v11 = vld [vmem:[#allocation3 + $0x4] sm:$0x3]  ;;  %v53_v12 = vmul.f32 %v49_v0, %v44_v9  ;;  %s177_s8 = smov [#allocation6]  }
   0x9   :  { %v66_v10 = vperm.slane %v50_v2, 0  ;;  %v45_v13 = vld [vmem:[%s247_s2 + $0x4] sm:$0x1]  ;;  %v67_v14 = vperm.slane %v51_v7, 0  ;;  %v36_v16 = vld [vmem:[#allocation3 + $0x6] sm:$0x3] }
   0xa   :  { %v68_v15 = vperm.slane %v52_v8, 0  ;;  %v54_v17 = vmul.f32 %v49_v0, %v45_v13  ;;  %v46_v18 = vld [vmem:[%s247_s2 + $0x5] sm:$0x1]  ;;  %v69_v20 = vperm.slane %v53_v12, 0  ;;  %v37_v21 = vld [vmem:[#allocation3 + $0x8] sm:$0x3] }
   0xb   :  { %v82_v19 = vadd.f32 %v66_v10, %v33_v5  ;;  %v55_v22 = vmul.f32 %v49_v0, %v46_v18  ;;  %v47_v23 = vld [vmem:[%s247_s2 + $0x6] sm:$0x1]  ;;  %v83_v24 = vadd.f32 %v67_v14, %v34_v6  ;;  %v38_v27 = vld [vmem:[#allocation3 + $0xa] sm:$0x3]  ;;  %v48_v29 = vld [vmem:[%s247_s2 + $0x7] sm:$0x1] }
   0xc   :  { %v84_v25 = vadd.f32 %v68_v15, %v35_v11  ;;  %v70_v26 = vperm.slane %v54_v17, 0  ;;  %v56_v28 = vmul.f32 %v49_v0, %v47_v23  ;;  %v85_v30 = vadd.f32 %v69_v20, %v36_v16  ;;  %v39_v32 = vld [vmem:[#allocation3 + $0xc] sm:$0x3]  ;;  %v40_v36 = vld [vmem:[#allocation3 + $0xe] sm:$0x3]  ;;  %s103_s9 = sshll.u32 %s177_s8, 4  ;;  %s104_s9 = int_to_ptr.vmem [resolvable:$true] %s103_s9 }
   0xd   :  { %91 = vst.msk [vmem:[#allocation6] sm:$0x3] %vm90_vm0, %v82_v19  ;;  %v71_v31 = vperm.slane %v55_v22, 0  ;;  %v57_v33 = vmul.f32 %v49_v0, %v48_v29  ;;  %s105_s2 = sshll.u32 %s248_s3, 4  ;;  %s106_s2 = int_to_ptr.hbm [resolvable:$true] %s105_s2 }
   0xe   :  { %92 = vst.msk [vmem:[#allocation6 + $0x2] sm:$0x3] %vm90_vm0, %v83_v24  ;;  %v86_v34 = vadd.f32 %v70_v26, %v37_v21  ;;  %v72_v35 = vperm.slane %v56_v28, 0 }
   0xf   :  { %93 = vst.msk [vmem:[#allocation6 + $0x4] sm:$0x3] %vm90_vm0, %v84_v25  ;;  %v87_v37 = vadd.f32 %v71_v31, %v38_v27  ;;  %v73_v38 = vperm.slane %v57_v33, 0 }
  0x10   :  { %94 = vst.msk [vmem:[#allocation6 + $0x6] sm:$0x3] %vm90_vm0, %v85_v30  ;;  %v88_v39 = vadd.f32 %v72_v35, %v39_v32 }
  0x11   :  { %95 = vst.msk [vmem:[#allocation6 + $0x8] sm:$0x3] %vm90_vm0, %v86_v34  ;;  %v89_v40 = vadd.f32 %v73_v38, %v40_v36 }
  0x12   :  { %96 = vst.msk [vmem:[#allocation6 + $0xa] sm:$0x3] %vm90_vm0, %v87_v37 }
  0x13   :  { %97 = vst.msk [vmem:[#allocation6 + $0xc] sm:$0x3] %vm90_vm0, %v88_v39 }
  0x14   :  { %98 = vst.msk [vmem:[#allocation6 + $0xe] sm:$0x3] %vm90_vm0, %v89_v40 }
  0x15   :  { %111 = dma.vmem_to_hbm [thread:$0]  %s104_s9, 256, %s106_s2, [#allocation5], %s175_s17, %s175_s17, %s176_s18  }
  0x16   :  { %172 = dma.done.wait [#allocation5], 256  }
  0x17   :  { %173 = vsyncadd [#allocation5], 4294967040 }
  0x18   :  { %116 = vsyncpa [#allocation4], 1 }
  0x19   :  { %117 = vsyncpa [#allocation5], 1 }

</bundles_post_ra>
